<compile_context>
chip_gen: v5e
topology: v5e:2x2
jax: 0.10.0
libtpu: 0.0.40
codegen_flags: <defaults>
</compile_context>

<pallas_src>
import functools

import jax
import jax.numpy as jnp
from jax.experimental import pallas as pl
from jax.experimental.pallas import tpu as pltpu


def _round_up(n: int, m: int) -> int:
    return ((n + m - 1) // m) * m


def mlp_kernel(x_ref, w1_ref, b1_ref, w2_ref, b2_ref, w3_ref, b3_ref, o_ref,
               *, in_dim: int):
    x = x_ref[...].astype(jnp.float32)

    # ---- Layer 1: tiny-K contraction done on the VPU (broadcast FMAs), not MXU.
    h1 = b1_ref[...]                                  # (1, HP) -> broadcasts up
    for k in range(in_dim):                           # static, fully unrolled
        h1 = h1 + x[:, k:k + 1] * w1_ref[k:k + 1, :]
    h1 = jnp.maximum(h1, 0.0)

    # ---- Layer 2: hidden x hidden on the MXU, f32 accumulation.
    h2 = jnp.dot(h1, w2_ref[...], preferred_element_type=jnp.float32) + b2_ref[...]
    h2 = jnp.maximum(h2, 0.0)

    # ---- Layer 3: output features are zero-padded to a lane-dense 128-wide slab,
    # so this store is a full-width unmasked vst.
    out = jnp.dot(h2, w3_ref[...], preferred_element_type=jnp.float32) + b3_ref[...]
    o_ref[...] = out.astype(o_ref.dtype)


def mlp_forward(x, params, *, tile_b: int = 512):
    w1, b1, w2, b2, w3, b3 = params
    batch, in_dim = x.shape
    hidden = w1.shape[1]
    out_dim = w3.shape[1]

    LANE = 128
    hp = _round_up(hidden, LANE)     # padded hidden width
    op = _round_up(out_dim, LANE)    # padded (lane-dense) output width

    # Zero-padding of weights/biases is numerically inert: padded lanes stay 0
    # through bias-add + ReLU and contribute nothing to later matmuls.
    f32 = jnp.float32
    w1p = jnp.zeros((in_dim, hp), f32).at[:, :hidden].set(w1.astype(f32))
    b1p = jnp.zeros((1, hp), f32).at[:, :hidden].set(b1.astype(f32))
    w2p = jnp.zeros((hp, hp), f32).at[:hidden, :hidden].set(w2.astype(f32))
    b2p = jnp.zeros((1, hp), f32).at[:, :hidden].set(b2.astype(f32))
    w3p = jnp.zeros((hp, op), f32).at[:hidden, :out_dim].set(w3.astype(f32))
    b3p = jnp.zeros((1, op), f32).at[:, :out_dim].set(b3.astype(f32))

    # Batch tiling: tile is a multiple of 8 sublanes; pad batch so the grid
    # divides evenly, then slice the tail rows off afterwards.
    tb = min(tile_b, _round_up(batch, 8))
    bp = _round_up(batch, tb)
    if bp != batch:
        x = jnp.pad(x, ((0, bp - batch), (0, 0)))

    grid = (bp // tb,)
    kernel = functools.partial(mlp_kernel, in_dim=in_dim)

    out_padded = pl.pallas_call(
        kernel,
        out_shape=jax.ShapeDtypeStruct((bp, op), x.dtype),
        grid=grid,
        in_specs=[
            # Activations: tiled along the batch grid axis.
            pl.BlockSpec((tb, in_dim), lambda i: (i, 0)),
            # Weights / biases: constant index_map -> VMEM-resident across steps.
            pl.BlockSpec((in_dim, hp), lambda i: (0, 0)),
            pl.BlockSpec((1, hp), lambda i: (0, 0)),
            pl.BlockSpec((hp, hp), lambda i: (0, 0)),
            pl.BlockSpec((1, hp), lambda i: (0, 0)),
            pl.BlockSpec((hp, op), lambda i: (0, 0)),
            pl.BlockSpec((1, op), lambda i: (0, 0)),
        ],
        out_specs=pl.BlockSpec((tb, op), lambda i: (i, 0)),
        compiler_params=pltpu.CompilerParams(
            dimension_semantics=("parallel",),   # shards batch across TCs on v7x
        ),
    )(x, w1p, b1p, w2p, b2p, w3p, b3p)

    return out_padded[:batch, :out_dim]


def init_params(key, input_dim=2, hidden_dim=64, dtype=jnp.float32):
    """PyTorch-style uniform(-1/sqrt(fan_in), 1/sqrt(fan_in)) init, deterministic."""
    def linear(key, fan_in, fan_out):
        kw, kb = jax.random.split(key)
        bound = 1.0 / jnp.sqrt(fan_in)
        # stored transposed relative to torch: (in, out)
        w = jax.random.uniform(kw, (fan_in, fan_out), dtype, -bound, bound)
        b = jax.random.uniform(kb, (1, fan_out), dtype, -bound, bound)
        return w, b

    k1, k2, k3 = jax.random.split(key, 3)
    w1, b1 = linear(k1, input_dim, hidden_dim)
    w2, b2 = linear(k2, hidden_dim, hidden_dim)
    w3, b3 = linear(k3, hidden_dim, input_dim)
    return (w1, b1, w2, b2, w3, b3)


if __name__ == "__main__":
    input_dim, hidden_dim, batch = 2, 64, 8

    key = jax.random.PRNGKey(0)
    kx, kp = jax.random.split(key)

    x = jax.random.normal(kx, (batch, input_dim), jnp.float32)
    params = init_params(kp, input_dim=input_dim, hidden_dim=hidden_dim)

    out = mlp_forward(x, params)
    jax.block_until_ready(out)

    # Reference check in plain JAX (unpadded math).
    w1, b1, w2, b2, w3, b3 = params
    ref = jnp.maximum(x @ w1 + b1, 0.0)
    ref = jnp.maximum(ref @ w2 + b2, 0.0)
    ref = ref @ w3 + b3
    assert out.shape == (batch, input_dim)
    assert jnp.allclose(out, ref, atol=1e-5, rtol=1e-5)

    print("KERNEL_OK")
</pallas_src>

<mosaic_0001>
module attributes {stable_mosaic.version = 11 : i64} {
  func.func @mlp_kernel(%arg0: i32, %arg1: memref<8x2xf32, #tpu.memory_space<vmem>>, %arg2: memref<2x128xf32, #tpu.memory_space<vmem>>, %arg3: memref<1x128xf32, #tpu.memory_space<vmem>>, %arg4: memref<128x128xf32, #tpu.memory_space<vmem>>, %arg5: memref<1x128xf32, #tpu.memory_space<vmem>>, %arg6: memref<128x128xf32, #tpu.memory_space<vmem>>, %arg7: memref<1x128xf32, #tpu.memory_space<vmem>>, %arg8: memref<8x128xf32, #tpu.memory_space<vmem>>) attributes {dimension_semantics = [#tpu.dimension_semantics<parallel>], iteration_bounds = array<i64: 1>, scalar_prefetch = 0 : i64, scratch_operands = 0 : i64, tpu.core_type = #tpu.core_type<tc>, window_params = [{transform_indices = @transform_0, window_bounds = array<i64: 8, 2>}, {pipeline_mode = #tpu.pipeline_mode<synchronous>, transform_indices = @transform_1, window_bounds = array<i64: 2, 128>}, {pipeline_mode = #tpu.pipeline_mode<synchronous>, transform_indices = @transform_2, window_bounds = array<i64: 1, 128>}, {pipeline_mode = #tpu.pipeline_mode<synchronous>, transform_indices = @transform_3, window_bounds = array<i64: 128, 128>}, {pipeline_mode = #tpu.pipeline_mode<synchronous>, transform_indices = @transform_4, window_bounds = array<i64: 1, 128>}, {pipeline_mode = #tpu.pipeline_mode<synchronous>, transform_indices = @transform_5, window_bounds = array<i64: 128, 128>}, {pipeline_mode = #tpu.pipeline_mode<synchronous>, transform_indices = @transform_6, window_bounds = array<i64: 1, 128>}, {transform_indices = @transform_7, window_bounds = array<i64: 8, 128>}]} {
    %c0 = arith.constant 0 : index
    %c0_0 = arith.constant 0 : index
    %0 = vector.load %arg1[%c0, %c0_0] : memref<8x2xf32, #tpu.memory_space<vmem>>, vector<8x2xf32>
    %c0_1 = arith.constant 0 : index
    %c0_2 = arith.constant 0 : index
    %1 = vector.load %arg3[%c0_1, %c0_2] : memref<1x128xf32, #tpu.memory_space<vmem>>, vector<1x128xf32>
    %2 = vector.extract_strided_slice %0 {offsets = [0, 0], sizes = [8, 1], strides = [1, 1]} : vector<8x2xf32> to vector<8x1xf32>
    %c0_3 = arith.constant 0 : index
    %c0_4 = arith.constant 0 : index
    %3 = vector.load %arg2[%c0_3, %c0_4] : memref<2x128xf32, #tpu.memory_space<vmem>>, vector<1x128xf32>
    %4 = vector.broadcast %2 : vector<8x1xf32> to vector<8x128xf32>
    %5 = vector.broadcast %3 : vector<1x128xf32> to vector<8x128xf32>
    %6 = arith.mulf %4, %5 : vector<8x128xf32>
    %7 = vector.broadcast %1 : vector<1x128xf32> to vector<8x128xf32>
    %8 = arith.addf %7, %6 : vector<8x128xf32>
    %9 = vector.extract_strided_slice %0 {offsets = [0, 1], sizes = [8, 1], strides = [1, 1]} : vector<8x2xf32> to vector<8x1xf32>
    %c1 = arith.constant 1 : index
    %c0_5 = arith.constant 0 : index
    %10 = vector.load %arg2[%c1, %c0_5] : memref<2x128xf32, #tpu.memory_space<vmem>>, vector<1x128xf32>
    %11 = vector.broadcast %9 : vector<8x1xf32> to vector<8x128xf32>
    %12 = vector.broadcast %10 : vector<1x128xf32> to vector<8x128xf32>
    %13 = arith.mulf %11, %12 : vector<8x128xf32>
    %14 = arith.addf %8, %13 : vector<8x128xf32>
    %cst = arith.constant 0.000000e+00 : f32
    %15 = vector.broadcast %cst : f32 to vector<8x128xf32>
    %16 = arith.maximumf %14, %15 : vector<8x128xf32>
    %c0_6 = arith.constant 0 : index
    %c0_7 = arith.constant 0 : index
    %17 = vector.load %arg4[%c0_6, %c0_7] : memref<128x128xf32, #tpu.memory_space<vmem>>, vector<128x128xf32>
    %cst_8 = arith.constant dense<0.000000e+00> : vector<8x128xf32>
    %18 = tpu.matmul %16, %17, %cst_8 {dimension_numbers = #tpu.dot_dimension_numbers<[1], [0], [0], [1], [0, 0, 1, 1], [], []>} : vector<8x128xf32>, vector<128x128xf32>, vector<8x128xf32> -> vector<8x128xf32>
    %c0_9 = arith.constant 0 : index
    %c0_10 = arith.constant 0 : index
    %19 = vector.load %arg5[%c0_9, %c0_10] : memref<1x128xf32, #tpu.memory_space<vmem>>, vector<1x128xf32>
    %20 = vector.broadcast %19 : vector<1x128xf32> to vector<8x128xf32>
    %21 = arith.addf %18, %20 : vector<8x128xf32>
    %cst_11 = arith.constant 0.000000e+00 : f32
    %22 = vector.broadcast %cst_11 : f32 to vector<8x128xf32>
    %23 = arith.maximumf %21, %22 : vector<8x128xf32>
    %c0_12 = arith.constant 0 : index
    %c0_13 = arith.constant 0 : index
    %24 = vector.load %arg6[%c0_12, %c0_13] : memref<128x128xf32, #tpu.memory_space<vmem>>, vector<128x128xf32>
    %cst_14 = arith.constant dense<0.000000e+00> : vector<8x128xf32>
    %25 = tpu.matmul %23, %24, %cst_14 {dimension_numbers = #tpu.dot_dimension_numbers<[1], [0], [0], [1], [0, 0, 1, 1], [], []>} : vector<8x128xf32>, vector<128x128xf32>, vector<8x128xf32> -> vector<8x128xf32>
    %c0_15 = arith.constant 0 : index
    %c0_16 = arith.constant 0 : index
    %26 = vector.load %arg7[%c0_15, %c0_16] : memref<1x128xf32, #tpu.memory_space<vmem>>, vector<1x128xf32>
    %27 = vector.broadcast %26 : vector<1x128xf32> to vector<8x128xf32>
    %28 = arith.addf %25, %27 : vector<8x128xf32>
    %c0_17 = arith.constant 0 : index
    %c0_18 = arith.constant 0 : index
    %29 = vector.load %arg8[%c0_17, %c0_18] : memref<8x128xf32, #tpu.memory_space<vmem>>, vector<8x128xf32>
    tpu.vector_store %arg8[%c0_17, %c0_18], %28 {strides = array<i32>} : memref<8x128xf32, #tpu.memory_space<vmem>>, vector<8x128xf32>,
    return
  }
  func.func @transform_0(%arg0: i32) -> (i32, i32) {
    %c0_i32 = arith.constant 0 : i32
    %c0_i32_0 = arith.constant 0 : i32
    return %arg0, %c0_i32 : i32, i32
  }
  func.func @transform_1(%arg0: i32) -> (i32, i32) {
    %c0_i32 = arith.constant 0 : i32
    %c0_i32_0 = arith.constant 0 : i32
    %c0_i32_1 = arith.constant 0 : i32
    return %c0_i32, %c0_i32_0 : i32, i32
  }
  func.func @transform_2(%arg0: i32) -> (i32, i32) {
    %c0_i32 = arith.constant 0 : i32
    %c0_i32_0 = arith.constant 0 : i32
    %c0_i32_1 = arith.constant 0 : i32
    return %c0_i32, %c0_i32_0 : i32, i32
  }
  func.func @transform_3(%arg0: i32) -> (i32, i32) {
    %c0_i32 = arith.constant 0 : i32
    %c0_i32_0 = arith.constant 0 : i32
    %c0_i32_1 = arith.constant 0 : i32
    return %c0_i32, %c0_i32_0 : i32, i32
  }
  func.func @transform_4(%arg0: i32) -> (i32, i32) {
    %c0_i32 = arith.constant 0 : i32
    %c0_i32_0 = arith.constant 0 : i32
    %c0_i32_1 = arith.constant 0 : i32
    return %c0_i32, %c0_i32_0 : i32, i32
  }
  func.func @transform_5(%arg0: i32) -> (i32, i32) {
    %c0_i32 = arith.constant 0 : i32
    %c0_i32_0 = arith.constant 0 : i32
    %c0_i32_1 = arith.constant 0 : i32
    return %c0_i32, %c0_i32_0 : i32, i32
  }
  func.func @transform_6(%arg0: i32) -> (i32, i32) {
    %c0_i32 = arith.constant 0 : i32
    %c0_i32_0 = arith.constant 0 : i32
    %c0_i32_1 = arith.constant 0 : i32
    return %c0_i32, %c0_i32_0 : i32, i32
  }
  func.func @transform_7(%arg0: i32) -> (i32, i32) {
    %c0_i32 = arith.constant 0 : i32
    %c0_i32_0 = arith.constant 0 : i32
    return %arg0, %c0_i32 : i32, i32
  }
}

</mosaic_0001>

<bundles_post_ra>
// kernel: tpu_custom_call.1
= control target key start
LH: loop header
LB: loop body
LE: loop exit
PB: predicated region body
PF: predicated region fallthrough
CT: control target
= control target key end

     0   :  { %12 = vsyncpa [#allocation3], 0  ;;  %s348_s0 = inlined_call_operand.vmem [shape: f32[8,2], index: 0, kind: input, shape index: {}]   ;;  %s349_s1 = inlined_call_operand.vmem [shape: f32[2,128], index: 1, kind: input, shape index: {}]   ;;  %s350_s2 = inlined_call_operand.vmem [shape: f32[1,128], index: 2, kind: input, shape index: {}]   ;;  %s351_s3 = inlined_call_operand.hbm [shape: f32[128,128], index: 3, kind: input, shape index: {}]   ;;  %s352_s4 = inlined_call_operand.vmem [shape: f32[1,128], index: 4, kind: input, shape index: {}]   ;;  %s353_s5 = inlined_call_operand.hbm [shape: f32[128,128], index: 5, kind: input, shape index: {}]   ;;  %s354_s6 = inlined_call_operand.vmem [shape: f32[1,128], index: 6, kind: input, shape index: {}]   ;;  %s355_s7 = inlined_call_operand.hbm [shape: f32[8,128], index: 7, kind: output, shape index: {}]  }
   0x1   :  { %13 = vsyncpa [#allocation6], 0 }
   0x2   :  { %14 = vsyncpa [#allocation4], 0  ;;  %s25_s26 = sshll.u32 %s351_s3, 4  ;;  %s274_s27 = smov [#allocation2]   ;;  %s26_s26 = int_to_ptr.hbm [resolvable:$true] %s25_s26 }
   0x3   :  { %s27_s28 = sshll.u32 %s274_s27, 4  ;;  %s40_s8 = sshll.u32 %s353_s5, 4  ;;  %s28_s28 = int_to_ptr.vmem [resolvable:$true] %s27_s28  ;;  %s41_s8 = int_to_ptr.hbm [resolvable:$true] %s40_s8 }
   0x4   :  { %s275_s9 = smov 128   ;;  %s276_s10 = smov 8  }
   0x5   :  { %33 = dma.hbm_to_vmem [thread:$0]  %s26_s26, 2048, %s28_s28, [#allocation3], %s275_s9, %s275_s9, %s276_s10  }
   0x6   :  { %s277_s11 = smov [#allocation5]  }
   0x7   :  { %s42_s12 = sshll.u32 %s277_s11, 4  ;;  %s43_s12 = int_to_ptr.vmem [resolvable:$true] %s42_s12 }
   0x8   :  { %48 = dma.hbm_to_vmem [thread:$0]  %s41_s8, 2048, %s43_s12, [#allocation6], %s275_s9, %s275_s9, %s276_s10  }
   0x9   :  { %268 = dma.done.wait [#allocation3], 2048  }
   0xa   :  { %269 = vsyncadd [#allocation3], 4294965248 }
   0xb   :  { %270 = dma.done.wait [#allocation6], 2048  }
   0xc   :  { %271 = vsyncadd [#allocation6], 4294965248  ;;  %v278_v0 = vmov 0   ;;  %v59_v1 = vld [vmem:[%s348_s0] sm:$0xff]  ;;  %v97_v2 = vld [vmem:[#allocation2 + $0x78] sm:$0xff]  ;;  %v279_v8 = vmov 1  }
   0xd   :  { %189 = vset.pattern.permute.xlu0 %v278_v0  ;;  %v96_v3 = vld [vmem:[#allocation2 + $0x70] sm:$0xff]  ;;  %102 = vmatpush.msra.mxu0 %v97_v2  ;;  %v95_v4 = vld [vmem:[#allocation2 + $0x68] sm:$0xff]  ;;  %v94_v5 = vld [vmem:[#allocation2 + $0x60] sm:$0xff]  ;;  %s280_s20 = smov [#allocation7]   ;;  %s171_s24 = sshll.u32 %s355_s7, 4  ;;  %s172_s24 = int_to_ptr.hbm [resolvable:$true] %s171_s24 }
   0xe   :  { %64 = vperm.xlu0 %189, %v59_v1   ;;  %v93_v6 = vld [vmem:[#allocation2 + $0x58] sm:$0xff]  ;;  %v92_v7 = vld [vmem:[#allocation2 + $0x50] sm:$0xff]  ;;  %v91_v9 = vld [vmem:[#allocation2 + $0x48] sm:$0xff]  ;;  %s169_s21 = sshll.u32 %s280_s20, 4  ;;  %s170_s21 = int_to_ptr.vmem [resolvable:$true] %s169_s21 }
   0xf   :  { %103 = vmatpush.msra.mxu0 %v96_v3  ;;  %v90_v10 = vld [vmem:[#allocation2 + $0x40] sm:$0xff]  ;;  %v89_v11 = vld [vmem:[#allocation2 + $0x38] sm:$0xff]  ;;  %v88_v12 = vld [vmem:[#allocation2 + $0x30] sm:$0xff] }
  0x10   :  { %v87_v13 = vld [vmem:[#allocation2 + $0x28] sm:$0xff]  ;;  %v86_v14 = vld [vmem:[#allocation2 + $0x20] sm:$0xff]  ;;  %v85_v15 = vld [vmem:[#allocation2 + $0x18] sm:$0xff] }
  0x11   :  { %104 = vmatpush.msra.mxu0 %v95_v4  ;;  %v84_v16 = vld [vmem:[#allocation2 + $0x10] sm:$0xff]  ;;  %v83_v17 = vld [vmem:[#allocation2 + $0x8] sm:$0xff]  ;;  %v82_v18 = vld [vmem:[#allocation2] sm:$0xff] }
  0x12   :  { %v138_v19 = vld [vmem:[#allocation5 + $0x78] sm:$0xff]  ;;  %v137_v20 = vld [vmem:[#allocation5 + $0x70] sm:$0xff]  ;;  %v136_v21 = vld [vmem:[#allocation5 + $0x68] sm:$0xff] }
  0x13   :  { %105 = vmatpush.msra.mxu0 %v94_v5  ;;  %143 = vmatpush.msra.mxu1 %v138_v19  ;;  %v135_v22 = vld [vmem:[#allocation5 + $0x60] sm:$0xff]  ;;  %v134_v23 = vld [vmem:[#allocation5 + $0x58] sm:$0xff]  ;;  %v133_v24 = vld [vmem:[#allocation5 + $0x50] sm:$0xff] }
  0x14   :  { %v132_v25 = vld [vmem:[#allocation5 + $0x48] sm:$0xff]  ;;  %v131_v26 = vld [vmem:[#allocation5 + $0x40] sm:$0xff]  ;;  %v130_v27 = vld [vmem:[#allocation5 + $0x38] sm:$0xff] }
  0x15   :  { %106 = vmatpush.msra.mxu0 %v93_v6  ;;  %144 = vmatpush.msra.mxu1 %v137_v20  ;;  %v129_v29 = vld [vmem:[#allocation5 + $0x30] sm:$0xff]  ;;  %v191_v30 = vld [vmem:[%s349_s1] ss:$0 sm:$0xff]  ;;  %v128_v31 = vld [vmem:[#allocation5 + $0x28] sm:$0xff] }
  0x16   :  { %190 = vset.pattern.permute.xlu0 %v279_v8  ;;  %v127_v32 = vld [vmem:[#allocation5 + $0x20] sm:$0xff]  ;;  %v126_v36 = vld [vmem:[#allocation5 + $0x18] sm:$0xff]  ;;  %v125_v42 = vld [vmem:[#allocation5 + $0x10] sm:$0xff] }
  0x17   :  { %75 = vperm.xlu0 %190, %v59_v1   ;;  %107 = vmatpush.msra.mxu0 %v92_v7  ;;  %v192_v33 = vld [vmem:[%s350_s2] ss:$0 sm:$0xff]  ;;  %v193_v35 = vld [vmem:[%s349_s1 + $0x1] ss:$0 sm:$0xff]  ;;  %v124_v43 = vld [vmem:[#allocation5 + $0x8] sm:$0xff] }
  0x18   :  { %145 = vmatpush.msra.mxu1 %v136_v21  ;;  %v123_v44 = vld [vmem:[#allocation5] sm:$0xff] }
  0x19   :  { %108 = vmatpush.msra.mxu0 %v91_v9  ;;  %v194_v45 = vld [vmem:[%s352_s4] ss:$0 sm:$0xff] }
  0x1a   :  { %146 = vmatpush.msra.mxu1 %v135_v22  ;;  %v195_v49 = vld [vmem:[%s354_s6] ss:$0 sm:$0xff] }
  0x1b   :  { %109 = vmatpush.msra.mxu0 %v90_v10 }
  0x1c   :  { %147 = vmatpush.msra.mxu1 %v134_v23 }
  0x1d   :  { %110 = vmatpush.msra.mxu0 %v89_v11 }
  0x1e   :  { %148 = vmatpush.msra.mxu1 %v133_v24 }
  0x1f   :  { %111 = vmatpush.msra.mxu0 %v88_v12 }
  0x20   :  { %149 = vmatpush.msra.mxu1 %v132_v25 }
  0x21   :  { %112 = vmatpush.msra.mxu0 %v87_v13 }
  0x22   :  { %150 = vmatpush.msra.mxu1 %v131_v26 }
  0x23   :  { %113 = vmatpush.msra.mxu0 %v86_v14 }
  0x24   :  { %151 = vmatpush.msra.mxu1 %v130_v27 }
  0x25   :  { %114 = vmatpush.msra.mxu0 %v85_v15 }
  0x26   :  { %152 = vmatpush.msra.mxu1 %v129_v29 }
  0x27   :  { %115 = vmatpush.msra.mxu0 %v84_v16 }
  0x28   :  { %153 = vmatpush.msra.mxu1 %v128_v31 }
  0x29   :  { %116 = vmatpush.msra.mxu0 %v83_v17 }
  0x2a   :  { %154 = vmatpush.msra.mxu1 %v127_v32 }
  0x2b   :  { %117 = vmatpush.msra.mxu0 %v82_v18 }
  0x2c   :  { %155 = vmatpush.msra.mxu1 %v126_v36 }
  0x2e   :  { %156 = vmatpush.msra.mxu1 %v125_v42 }
  0x30   :  { %157 = vmatpush.msra.mxu1 %v124_v43 }
  0x32   :  { %158 = vmatpush.msra.mxu1 %v123_v44 }
  0x80   :  { %v65_v28 = vpop.permute.xlu0 %64 }
  0x81   :  { %v68_v34 = vmul.f32 %v191_v30, %v65_v28 }
  0x83   :  { %v72_v38 = vadd.f32 %v192_v33, %v68_v34 }
  0x89   :  { %v76_v37 = vpop.permute.xlu0 %75 }
  0x8a   :  { %v79_v39 = vmul.f32 %v193_v35, %v76_v37 }
  0x8c   :  { %v80_v40 = vadd.f32 %v79_v39, %v72_v38 }
  0x8e   :  { %v81_v41 = vmax.f32 %v80_v40, 0.0 }
  0x90   :  { %118 = vmatmul.f32.vlgmr.msra.gmra.mxu0 %v81_v41 }
 0x10d   :  { %v119_v46 = vpop.f32.mrf.mxu0 }
 0x10e   :  { %v120_v47 = vadd.f32 %v194_v45, %v119_v46 }
 0x110   :  { %v122_v48 = vmax.f32 %v120_v47, 0.0 }
 0x112   :  { %159 = vmatmul.f32.vlgmr.msra.gmra.mxu1 %v122_v48 }
 0x18f   :  { %v160_v50 = vpop.f32.mrf.mxu1 }
 0x190   :  { %v161_v51 = vadd.f32 %v195_v49, %v160_v50 }
 0x192   :  { %163 = vst [vmem:[#allocation7] sm:$0xff] %v161_v51 }
 0x193   :  { %174 = dma.vmem_to_hbm [thread:$0]  %s170_s21, 128, %s172_s24, [#allocation4]  }
 0x194   :  { %272 = dma.done.wait [#allocation4], 128  }
 0x195   :  { %273 = vsyncadd [#allocation4], 4294967168 }
 0x196   :  { %179 = vsyncpa [#allocation3], 1 }
 0x197   :  { %180 = vsyncpa [#allocation6], 1 }
 0x198   :  { %181 = vsyncpa [#allocation4], 1 }

</bundles_post_ra>
